<compile_context>
chip_gen: v7x
topology: tpu7x:2x2x1
jax: 0.10.0
libtpu: 0.0.40
codegen_flags: <defaults>
</compile_context>

<pallas_src>
import jax
import jax.numpy as jnp
from jax.experimental import pallas as pl
from jax.experimental.pallas import tpu as pltpu


def _pick_spatial_tile(hw, c, itemsize, max_block_bytes):
    """Largest multiple-of-128 divisor of hw whose (c, tile) block fits the budget."""
    if hw % 128 != 0:
        return hw                      # full-extent block is always legal
    best = 128
    for k in range(1, hw // 128 + 1):
        t = 128 * k
        if hw % t == 0 and c * t * itemsize <= max_block_bytes:
            best = t
    return best


def channel_attention(x, w1, b1, w2, b2, *, max_block_bytes=4 << 20):
    """x: (B, C, H, W) NCHW. Returns fc(avg) + fc(max) broadcast to (B, C, H, W)."""
    B, C, H, W = x.shape
    HW = H * W
    Hd = w1.shape[0]

    x_flat = x.reshape(B, C, HW)                       # glue reshape (lazy in XLA)
    w1f = w1.astype(jnp.float32)
    w2f = w2.astype(jnp.float32)
    b1c = b1.reshape(Hd, 1).astype(jnp.float32)
    b2c = b2.reshape(C, 1).astype(jnp.float32)

    t_hw = _pick_spatial_tile(HW, C, jnp.dtype(x.dtype).itemsize, max_block_bytes)
    n_t = HW // t_hw
    inv_hw = 1.0 / float(HW)                           # true HW, not per-tile size

    def kernel(x_ref, w1_ref, b1_ref, w2_ref, b2_ref, out_ref, sum_sc, max_sc):
        t = pl.program_id(1)

        @pl.when(t == 0)
        def _init():
            sum_sc[...] = jnp.zeros_like(sum_sc)
            max_sc[...] = jnp.full(max_sc.shape, -jnp.inf, dtype=max_sc.dtype)

        x2 = x_ref[...].astype(jnp.float32)            # (C, T_HW), f32 accumulate
        sum_sc[...] = sum_sc[...] + jnp.sum(x2, axis=1, keepdims=True)
        max_sc[...] = jnp.maximum(max_sc[...], jnp.max(x2, axis=1, keepdims=True))

        @pl.when(t == pl.num_programs(1) - 1)
        def _finalize():
            avg = sum_sc[...] * inv_hw                 # (C, 1)
            mx = max_sc[...]                           # (C, 1)
            # Shared MLP: fc(avg) + fc(mx), no lane-axis concat.
            h = jnp.maximum(
                jnp.dot(w1_ref[...], avg, preferred_element_type=jnp.float32)
                + b1_ref[...], 0.0)                    # (Hd, 1)
            h = h + jnp.maximum(
                jnp.dot(w1_ref[...], mx, preferred_element_type=jnp.float32)
                + b1_ref[...], 0.0)
            att = (jnp.dot(w2_ref[...], h, preferred_element_type=jnp.float32)
                   + 2.0 * b2_ref[...])                # (C, 1)
            out_ref[...] = att.astype(out_ref.dtype)

    att = pl.pallas_call(
        kernel,
        out_shape=jax.ShapeDtypeStruct((B, C, 1), jnp.float32),
        grid_spec=pltpu.PrefetchScalarGridSpec(
            num_scalar_prefetch=0,
            grid=(B, n_t),
            in_specs=[
                # x: one batch element, one lane-dense spatial tile at a time.
                pl.BlockSpec((pl.Squeezed(), C, t_hw), lambda b, t: (b, 0, t)),
                pl.BlockSpec((Hd, C), lambda b, t: (0, 0)),    # w1
                pl.BlockSpec((Hd, 1), lambda b, t: (0, 0)),    # b1
                pl.BlockSpec((C, Hd), lambda b, t: (0, 0)),    # w2
                pl.BlockSpec((C, 1), lambda b, t: (0, 0)),     # b2
            ],
            # Output block is constant along the t axis -> resident accumulator,
            # written once in the finalize branch.
            out_specs=pl.BlockSpec((pl.Squeezed(), C, 1), lambda b, t: (b, 0, 0)),
            scratch_shapes=[pltpu.VMEM((C, 1), jnp.float32),   # running sum
                            pltpu.VMEM((C, 1), jnp.float32)],  # running max
        ),
        compiler_params=pltpu.CompilerParams(
            dimension_semantics=("parallel", "arbitrary"),
            vmem_limit_bytes=32 * 1024 * 1024,
        ),
    )(x_flat, w1f, b1c, w2f, b2c)

    # Broadcast is done outside the kernel (consumer / XLA fuses it); the kernel
    # never writes the redundant (B, C, H, W) slab to HBM.
    att = att.astype(x.dtype)
    return jnp.broadcast_to(att[:, :, :, None], (B, C, H, W))


def _reference(x, w1, b1, w2, b2):
    B, C, H, W = x.shape
    flat = x.reshape(B, C, H * W)
    avg = flat.mean(axis=2)
    mx = flat.max(axis=2)

    def fc(f):
        h = jnp.maximum(f @ w1.T + b1, 0.0)
        return h @ w2.T + b2

    att = fc(avg) + fc(mx)
    return jnp.broadcast_to(att[:, :, None, None], x.shape)


if __name__ == "__main__":
    # Small shapes consistent with the module: reduction_ratio=16 needs C >= 16.
    B, C, H, W = 2, 64, 16, 16
    reduction_ratio = 16
    Hd = C // reduction_ratio  # 4

    key = jax.random.PRNGKey(0)
    kx, k1, k2, k3, k4 = jax.random.split(key, 5)

    x = jax.random.normal(kx, (B, C, H, W), dtype=jnp.float32)

    # nn.Linear-style init: U(-1/sqrt(fan_in), +1/sqrt(fan_in)).
    bound1 = 1.0 / (C ** 0.5)
    w1 = jax.random.uniform(k1, (Hd, C), jnp.float32, -bound1, bound1)
    b1 = jax.random.uniform(k2, (Hd,), jnp.float32, -bound1, bound1)
    bound2 = 1.0 / (Hd ** 0.5)
    w2 = jax.random.uniform(k3, (C, Hd), jnp.float32, -bound2, bound2)
    b2 = jax.random.uniform(k4, (C,), jnp.float32, -bound2, bound2)

    # Small max_block_bytes forces T_HW = 128 (2 spatial tiles per batch element)
    # so the tiled init/accumulate/finalize path is exercised at test shapes.
    out = channel_attention(x, w1, b1, w2, b2, max_block_bytes=32 * 1024)
    out = jax.block_until_ready(out)

    ref = _reference(x, w1, b1, w2, b2)
    assert out.shape == (B, C, H, W)
    assert jnp.allclose(out, ref, atol=1e-5, rtol=1e-5), "mismatch vs JAX reference"

    print("KERNEL_OK")
</pallas_src>

<mosaic_0001>
module attributes {stable_mosaic.version = 11 : i64} {
  func.func @kernel(%arg0: i32, %arg1: i32, %arg2: memref<1x64x128xf32, #tpu.memory_space<vmem>>, %arg3: memref<4x64xf32, #tpu.memory_space<vmem>>, %arg4: memref<4x1xf32, #tpu.memory_space<vmem>>, %arg5: memref<64x4xf32, #tpu.memory_space<vmem>>, %arg6: memref<64x1xf32, #tpu.memory_space<vmem>>, %arg7: memref<1x64x1xf32, #tpu.memory_space<vmem>>, %arg8: memref<64x1xf32, #tpu.memory_space<vmem>>, %arg9: memref<64x1xf32, #tpu.memory_space<vmem>>) attributes {dimension_semantics = [#tpu.dimension_semantics<parallel>, #tpu.dimension_semantics<arbitrary>], iteration_bounds = array<i64: 2, 2>, scalar_prefetch = 0 : i64, scratch_operands = 2 : i64, tpu.core_type = #tpu.core_type<tc>, window_params = [{transform_indices = @transform_0, window_bounds = array<i64: 1, 64, 128>}, {pipeline_mode = #tpu.pipeline_mode<synchronous>, transform_indices = @transform_1, window_bounds = array<i64: 4, 64>}, {pipeline_mode = #tpu.pipeline_mode<synchronous>, transform_indices = @transform_2, window_bounds = array<i64: 4, 1>}, {pipeline_mode = #tpu.pipeline_mode<synchronous>, transform_indices = @transform_3, window_bounds = array<i64: 64, 4>}, {pipeline_mode = #tpu.pipeline_mode<synchronous>, transform_indices = @transform_4, window_bounds = array<i64: 64, 1>}, {transform_indices = @transform_5, window_bounds = array<i64: 1, 64, 1>}]} {
    %c0_i32 = arith.constant 0 : i32
    %0 = arith.cmpi eq, %arg1, %c0_i32 : i32
    %1 = arith.extui %0 : i1 to i32
    %c0_i32_0 = arith.constant 0 : i32
    %2 = arith.cmpi ne, %1, %c0_i32_0 : i32
    scf.if %2 {
      %cst_13 = arith.constant 0.000000e+00 : f32
      %18 = vector.broadcast %cst_13 : f32 to vector<64x1xf32>
      %c0_14 = arith.constant 0 : index
      %c0_15 = arith.constant 0 : index
      %19 = vector.load %arg8[%c0_14, %c0_15] : memref<64x1xf32, #tpu.memory_space<vmem>>, vector<64x1xf32>
      tpu.vector_store %arg8[%c0_14, %c0_15], %18 {strides = array<i32>} : memref<64x1xf32, #tpu.memory_space<vmem>>, vector<64x1xf32>,
      %cst_16 = arith.constant 0xFF800000 : f32
      %20 = vector.broadcast %cst_16 : f32 to vector<64x1xf32>
      %c0_17 = arith.constant 0 : index
      %c0_18 = arith.constant 0 : index
      %21 = vector.load %arg9[%c0_17, %c0_18] : memref<64x1xf32, #tpu.memory_space<vmem>>, vector<64x1xf32>
      tpu.vector_store %arg9[%c0_17, %c0_18], %20 {strides = array<i32>} : memref<64x1xf32, #tpu.memory_space<vmem>>, vector<64x1xf32>,
    } else {
    }
    %c0 = arith.constant 0 : index
    %c0_1 = arith.constant 0 : index
    %c0_2 = arith.constant 0 : index
    %3 = vector.load %arg2[%c0, %c0_1, %c0_2] : memref<1x64x128xf32, #tpu.memory_space<vmem>>, vector<1x64x128xf32>
    %4 = vector.shape_cast %3 : vector<1x64x128xf32> to vector<64x128xf32>
    %c0_3 = arith.constant 0 : index
    %c0_4 = arith.constant 0 : index
    %5 = vector.load %arg8[%c0_3, %c0_4] : memref<64x1xf32, #tpu.memory_space<vmem>>, vector<64x1xf32>
    %cst = arith.constant dense<0.000000e+00> : vector<64xf32>
    %6 = vector.multi_reduction <add>, %4, %cst [1] : vector<64x128xf32> to vector<64xf32>
    %7 = vector.shape_cast %6 : vector<64xf32> to vector<64x1xf32>
    %8 = arith.addf %5, %7 : vector<64x1xf32>
    %c0_5 = arith.constant 0 : index
    %c0_6 = arith.constant 0 : index
    %9 = vector.load %arg8[%c0_5, %c0_6] : memref<64x1xf32, #tpu.memory_space<vmem>>, vector<64x1xf32>
    tpu.vector_store %arg8[%c0_5, %c0_6], %8 {strides = array<i32>} : memref<64x1xf32, #tpu.memory_space<vmem>>, vector<64x1xf32>,
    %c0_7 = arith.constant 0 : index
    %c0_8 = arith.constant 0 : index
    %10 = vector.load %arg9[%c0_7, %c0_8] : memref<64x1xf32, #tpu.memory_space<vmem>>, vector<64x1xf32>
    %cst_9 = arith.constant dense<0xFF800000> : vector<64xf32>
    %11 = vector.multi_reduction <maximumf>, %4, %cst_9 [1] : vector<64x128xf32> to vector<64xf32>
    %12 = vector.shape_cast %11 : vector<64xf32> to vector<64x1xf32>
    %13 = arith.maximumf %10, %12 : vector<64x1xf32>
    %c0_10 = arith.constant 0 : index
    %c0_11 = arith.constant 0 : index
    %14 = vector.load %arg9[%c0_10, %c0_11] : memref<64x1xf32, #tpu.memory_space<vmem>>, vector<64x1xf32>
    tpu.vector_store %arg9[%c0_10, %c0_11], %13 {strides = array<i32>} : memref<64x1xf32, #tpu.memory_space<vmem>>, vector<64x1xf32>,
    %c1_i32 = arith.constant 1 : i32
    %15 = arith.cmpi eq, %arg1, %c1_i32 : i32
    %16 = arith.extui %15 : i1 to i32
    %c0_i32_12 = arith.constant 0 : i32
    %17 = arith.cmpi ne, %16, %c0_i32_12 : i32
    scf.if %17 {
      %c0_13 = arith.constant 0 : index
      %c0_14 = arith.constant 0 : index
      %18 = vector.load %arg8[%c0_13, %c0_14] : memref<64x1xf32, #tpu.memory_space<vmem>>, vector<64x1xf32>
      %cst_15 = arith.constant 3.906250e-03 : f32
      %19 = vector.broadcast %cst_15 : f32 to vector<64x1xf32>
      %20 = arith.mulf %18, %19 : vector<64x1xf32>
      %c0_16 = arith.constant 0 : index
      %c0_17 = arith.constant 0 : index
      %21 = vector.load %arg9[%c0_16, %c0_17] : memref<64x1xf32, #tpu.memory_space<vmem>>, vector<64x1xf32>
      %c0_18 = arith.constant 0 : index
      %c0_19 = arith.constant 0 : index
      %22 = vector.load %arg3[%c0_18, %c0_19] : memref<4x64xf32, #tpu.memory_space<vmem>>, vector<4x64xf32>
      %cst_20 = arith.constant dense<0.000000e+00> : vector<4x1xf32>
      %23 = tpu.matmul %22, %20, %cst_20 {dimension_numbers = #tpu.dot_dimension_numbers<[1], [0], [0], [1], [0, 0, 1, 1], [], []>} : vector<4x64xf32>, vector<64x1xf32>, vector<4x1xf32> -> vector<4x1xf32>
      %c0_21 = arith.constant 0 : index
      %c0_22 = arith.constant 0 : index
      %24 = vector.load %arg4[%c0_21, %c0_22] : memref<4x1xf32, #tpu.memory_space<vmem>>, vector<4x1xf32>
      %25 = arith.addf %23, %24 : vector<4x1xf32>
      %cst_23 = arith.constant 0.000000e+00 : f32
      %26 = vector.broadcast %cst_23 : f32 to vector<4x1xf32>
      %27 = arith.maximumf %25, %26 : vector<4x1xf32>
      %c0_24 = arith.constant 0 : index
      %c0_25 = arith.constant 0 : index
      %28 = vector.load %arg3[%c0_24, %c0_25] : memref<4x64xf32, #tpu.memory_space<vmem>>, vector<4x64xf32>
      %cst_26 = arith.constant dense<0.000000e+00> : vector<4x1xf32>
      %29 = tpu.matmul %28, %21, %cst_26 {dimension_numbers = #tpu.dot_dimension_numbers<[1], [0], [0], [1], [0, 0, 1, 1], [], []>} : vector<4x64xf32>, vector<64x1xf32>, vector<4x1xf32> -> vector<4x1xf32>
      %c0_27 = arith.constant 0 : index
      %c0_28 = arith.constant 0 : index
      %30 = vector.load %arg4[%c0_27, %c0_28] : memref<4x1xf32, #tpu.memory_space<vmem>>, vector<4x1xf32>
      %31 = arith.addf %29, %30 : vector<4x1xf32>
      %cst_29 = arith.constant 0.000000e+00 : f32
      %32 = vector.broadcast %cst_29 : f32 to vector<4x1xf32>
      %33 = arith.maximumf %31, %32 : vector<4x1xf32>
      %34 = arith.addf %27, %33 : vector<4x1xf32>
      %c0_30 = arith.constant 0 : index
      %c0_31 = arith.constant 0 : index
      %35 = vector.load %arg5[%c0_30, %c0_31] : memref<64x4xf32, #tpu.memory_space<vmem>>, vector<64x4xf32>
      %cst_32 = arith.constant dense<0.000000e+00> : vector<64x1xf32>
      %36 = tpu.matmul %35, %34, %cst_32 {dimension_numbers = #tpu.dot_dimension_numbers<[1], [0], [0], [1], [0, 0, 1, 1], [], []>} : vector<64x4xf32>, vector<4x1xf32>, vector<64x1xf32> -> vector<64x1xf32>
      %c0_33 = arith.constant 0 : index
      %c0_34 = arith.constant 0 : index
      %37 = vector.load %arg6[%c0_33, %c0_34] : memref<64x1xf32, #tpu.memory_space<vmem>>, vector<64x1xf32>
      %cst_35 = arith.constant 2.000000e+00 : f32
      %38 = vector.broadcast %cst_35 : f32 to vector<64x1xf32>
      %39 = arith.mulf %38, %37 : vector<64x1xf32>
      %40 = arith.addf %36, %39 : vector<64x1xf32>
      %c0_36 = arith.constant 0 : index
      %c0_37 = arith.constant 0 : index
      %c0_38 = arith.constant 0 : index
      %41 = vector.load %arg7[%c0_36, %c0_37, %c0_38] : memref<1x64x1xf32, #tpu.memory_space<vmem>>, vector<1x64x1xf32>
      %42 = vector.shape_cast %41 : vector<1x64x1xf32> to vector<64x1xf32>
      %43 = vector.shape_cast %40 : vector<64x1xf32> to vector<1x64x1xf32>
      tpu.vector_store %arg7[%c0_36, %c0_37, %c0_38], %43 {strides = array<i32>} : memref<1x64x1xf32, #tpu.memory_space<vmem>>, vector<1x64x1xf32>,
    } else {
    }
    return
  }
  func.func @transform_0(%arg0: i32, %arg1: i32) -> (i32, i32, i32) {
    %c0_i32 = arith.constant 0 : i32
    %c0_i32_0 = arith.constant 0 : i32
    return %arg0, %c0_i32, %arg1 : i32, i32, i32
  }
  func.func @transform_1(%arg0: i32, %arg1: i32) -> (i32, i32) {
    %c0_i32 = arith.constant 0 : i32
    %c0_i32_0 = arith.constant 0 : i32
    %c0_i32_1 = arith.constant 0 : i32
    return %c0_i32, %c0_i32_0 : i32, i32
  }
  func.func @transform_2(%arg0: i32, %arg1: i32) -> (i32, i32) {
    %c0_i32 = arith.constant 0 : i32
    %c0_i32_0 = arith.constant 0 : i32
    %c0_i32_1 = arith.constant 0 : i32
    return %c0_i32, %c0_i32_0 : i32, i32
  }
  func.func @transform_3(%arg0: i32, %arg1: i32) -> (i32, i32) {
    %c0_i32 = arith.constant 0 : i32
    %c0_i32_0 = arith.constant 0 : i32
    %c0_i32_1 = arith.constant 0 : i32
    return %c0_i32, %c0_i32_0 : i32, i32
  }
  func.func @transform_4(%arg0: i32, %arg1: i32) -> (i32, i32) {
    %c0_i32 = arith.constant 0 : i32
    %c0_i32_0 = arith.constant 0 : i32
    %c0_i32_1 = arith.constant 0 : i32
    return %c0_i32, %c0_i32_0 : i32, i32
  }
  func.func @transform_5(%arg0: i32, %arg1: i32) -> (i32, i32, i32) {
    %c0_i32 = arith.constant 0 : i32
    %c0_i32_0 = arith.constant 0 : i32
    %c0_i32_1 = arith.constant 0 : i32
    return %arg0, %c0_i32, %c0_i32_0 : i32, i32, i32
  }
}

</mosaic_0001>

<bundles_post_ra>
// kernel: tpu_custom_call.1
= control target key start
LH: loop header
LB: loop body
LE: loop exit
PB: predicated region body
PF: predicated region fallthrough
CT: control target
= control target key end

     0   :  { %10 = vsyncpa [#allocation5], 0  ;;  %s1416_s0 = inlined_call_operand.hbm [shape: f32[2,64,256], index: 0, kind: input, shape index: {}]   ;;  %s1417_s1 = inlined_call_operand.vmem [shape: f32[4,64], index: 1, kind: input, shape index: {}]   ;;  %s1418_s2 = inlined_call_operand.vmem [shape: f32[4,1], index: 2, kind: input, shape index: {}]   ;;  %s1419_s3 = inlined_call_operand.vmem [shape: f32[64,4], index: 3, kind: input, shape index: {}]   ;;  %s1420_s4 = inlined_call_operand.vmem [shape: f32[64,1], index: 4, kind: input, shape index: {}]   ;;  %s1421_s5 = inlined_call_operand.vmem [shape: f32[2,64,1], index: 5, kind: output, shape index: {}]  }
   0x1   :  { %12 = vsyncpa [#allocation5 + $0x1], 0  ;;  %s1141_s18 = smov 0   ;;  %s1143_s19 = smov 0  }
   0x2   :  { %s1145_s20 = smov 0   ;;  %s1147_s21 = smov 0  }
   0x3   :  { %s1149_s22 = smov 0   ;;  %s1151_s23 = smov 0  }
   0x4   :  { %s1153_s24 = smov 0   ;;  %s1155_s25 = smov 0  }
   0x5 LB: > { %s793_s26 = sadd.s32 4294967295, %s1100_s25   ;;  %s27_s27 = sadd.s32 1, %s1092_s23  ;;  %s1100_s25 = sphi %s1155_s25, %s18_s25   ;;  %s1096_s24 = sphi %s1153_s24, %s1435_s24   ;;  %s1092_s23 = sphi %s1151_s23, %s1434_s23   ;;  %s1088_s22 = sphi %s1149_s22, %s1433_s22   ;;  %s1084_s21 = sphi %s1147_s21, %s1432_s21   ;;  %s1080_s20 = sphi %s1145_s20, %s1431_s20   ;;  %s1076_s19 = sphi %s1143_s19, %s1430_s19   ;;  %s1072_s18 = sphi %s1141_s18, %s1429_s18  }
   0x6   : > { %p28_p0 = scmp.ge.s32.totalorder %s27_s27, 2  ;;  %s30_s28 = sadd.s32 1, %s1096_s24 }
   0x7   : > { %s39_s29 = sadd.s32 1, %s1080_s20  ;;  %p46_p1 = scmp.ne.s32.totalorder %s1080_s20, %s1076_s19 }
   0x8   : > { %s1437_s27 = smov (%p28_p0, %s27_s27), 0  ;;  %s1439_s28 = smov (!%p28_p0, %s30_s28), %s1096_s24 }
   0x9   : > { %1423 = sst [smem:[#allocation7_spill]] %s1437_s27  ;;  %s35_s30 = ssub.s32 %s1092_s23, %s1437_s27 }
   0xa   : > { %p47_p2 = scmp.eq.s32.totalorder %s1100_s25, 0  ;;  %p32_p3 = scmp.ge.s32.totalorder %s1439_s28, 2 }
   0xb   : > { %p52_p4 = scmp.ne.s32.totalorder %s1076_s19, %s1072_s18  ;;  %p53_p6 = scmp.eq.s32.totalorder %s793_s26, 0 }
   0xc   : > { %p1192_p5 = por %p47_p2, %p46_p1  ;;  %s1441_s28 = smov (%p32_p3, %s1439_s28), 0 }
   0xd   : > { %p1198_p7 = por %p53_p6, %p52_p4  ;;  %s34_s8 = ssub.s32 %s1096_s24, %s1441_s28 }
   0xe   : > { %p931_p8 = scmp.lt.s32.totalorder %s1100_s25, 4  ;;  %s36_s9 = sor.u32 %s35_s30, %s34_s8 }
   0xf   : > { %s198_s10 = sand.u32 1, %s1080_s20   ;;  %p37_p9 = scmp.eq.s32.totalorder %s36_s9, 0 }
  0x10   : > { %s797_s11 = sshll.u32 %s198_s10, 6  ;;  %s798_s12 = sshll.u32 %s1096_s24, 4 }
  0x11   : > { %s1208_s13 = scalar_select %p37_p9, %s1080_s20, %s39_s29  }
  0x12   : > { %s207_s14 = sadd.s32 %s1092_s23, %s798_s12  ;;  %s202_s16 = scalar_lea.vmem [#allocation4], %s797_s11 }
  0x13   : > { %s799_s15 = sshll.u32 %s207_s14, 7  ;;  %s210_s17 = sshll.u32 %s202_s16, 4  ;;  %s1216_s17 = int_to_ptr.vmem [resolvable:$true] %s210_s17 }
  0x14   : > { %s1214_s27 = scalar_lea.hbm %s1416_s0, %s799_s15  ;;  %p1222_p10 = pnand %p931_p8, %p1192_p5 }
  0x15   : > { %s1227_s30 = scalar_lea.sflag [#allocation5], %s198_s10  ;;  %s1004_s8 = scalar_lea.hbm %s1214_s27, 1024 }
  0x16   : > { %p1005_p12 = scmp.ne.s32.totalorder %s1214_s27, %s1004_s8  ;;  %p1006_p13 = pneg %p1222_p10 }
  0x17   : > { %s1009_s11 = scalar_lea.hbm %s1416_s0, 4096  ;;  %p1010_p2 = scmp.lt.u32.totalorder %s1214_s27, %s1416_s0 }
  0x18   : > { %p1007_p0 = pnand %p1006_p13, %p1005_p12  ;;  %p1011_p3 = scmp.lt.u32.totalorder %s1009_s11, %s1004_s8 }
  0x19   : > { %p1013_p5 = scmp.lt.u32.totalorder %s1004_s8, %s1214_s27 }
  0x1a   : > { %p1008_p1 = pneg %p1007_p0  ;;  %p1012_p4 = por %p1011_p3, %p1010_p2 }
  0x1c   : > { %p1014_p6 = por %p1013_p5, %p1012_p4 }
  0x1e   : > { %p1015_p8 = pnand %p1014_p6, %p1008_p1 }
  0x20   : > { %1018 = shalt.err (!%p1015_p8)
}
  0x21   : > { %s1019_s10 = scalar_lea.vmem %s1216_s17, 1024  ;;  %s1102_s15 = smov [#allocation4]  }
  0x22   : > { %p1020_p9 = scmp.ne.s32.totalorder %s1216_s17, %s1019_s10  ;;  %s1024_s16 = sshll.u32 %s1102_s15, 4  ;;  %s1025_s16 = int_to_ptr.vmem [resolvable:$false] %s1024_s16 }
  0x23   : > { %s1026_s18 = scalar_lea.vmem %s1025_s16, 2048  ;;  %p1027_p11 = scmp.lt.s32.totalorder %s1216_s17, %s1025_s16 }
  0x24   : > { %p1022_p12 = pnand %p1020_p9, %p1006_p13  ;;  %p1028_p2 = scmp.lt.s32.totalorder %s1026_s18, %s1019_s10 }
  0x26   : > { %p1023_p0 = pneg %p1022_p12  ;;  %p1029_p3 = por %p1028_p2, %p1027_p11 }
  0x28   : > { %p1030_p4 = pnand %p1029_p3, %p1023_p0 }
  0x2a   : > { %1033 = shalt.err (!%p1030_p4)
}
  0x2b   : > { %s1103_s26 = smov 256   ;;  %s1104_s8 = smov 128  }
  0x2c   : > { %s1105_s9 = smov 8   ;;  %p218_p13 = scmp.lt.s32.totalorder %s1100_s25, 5 }
  0x2d   : > { %930 = dma.hbm_to_vmem [thread:$0]  (!%p1222_p10), %s1214_s27, 1024, %s1216_s17, %s1227_s30, %s1103_s26, %s1104_s8, %s1105_s9  }
  0x2e   : > { %p1427_p1 = scmp.ge.s32.totalorder %s1100_s25, 1 }
  0x30   : > { %p219_p5 = pnand %p1427_p1, %p218_p13 }
  0x31   : > { %s224_s6 = sand.u32 (!%p219_p5), 1, %s1076_s19  }
  0x32   : > { %222 = sbr.rel (%p219_p5) target bundleno = 695 (0x2b7), region = 40  ;;  %s801_s11 = sshll.u32 (!%p219_p5), %s224_s6, 6 }
  0x33   : > { %s225_s12 = scalar_lea.sflag (!%p219_p5), [#allocation5], %s224_s6  ;;  %s1259_s14 = scalar_lea.vmem (!%p219_p5), [#allocation4], %s801_s11 }
  0x39   : > { %1067 = dma.done.wait (%p1198_p7), %s225_s12, 1024  }
  0x3a   : > { %1069 = vsyncadd (%p1198_p7), %s225_s12, 4294966272  ;;  %p255_p11 = scmp.lt.s32.totalorder %s1088_s22, 1  ;;  %p804_p10 = scmp.ne.s32.totalorder %s1084_s21, 0 }
  0x3b   : > { %vm264_vm0 = vcmask (!%p804_p10), 7168   ;;  %v1106_v0 = vmov (!%p804_p10), 0.0   ;;  %v1107_v1 = vmov (!%p804_p10), -inf  }
  0x3c   : > { %s1443_s22 = smov (!%p255_p11, %s1088_s22), 1  ;;  %263 = sbr.rel (%p804_p10) target bundleno = 69 (0x45), region = 48 }
  0x3d   : > { %s819_s27 = sshll.u32 %s1443_s22, 6  ;;  %265 = vst.msk [vmem:[#allocation2] sm:$0xff] (!%p804_p10), %vm264_vm0, %v1106_v0  ;;  %266 = vst.msk [vmem:[#allocation2 + $0x8] sm:$0xff] (!%p804_p10), %vm264_vm0, %v1106_v0 }
  0x3e   : > { %s1270_s30 = scalar_lea.vmem %s1421_s5, %s819_s27  ;;  %267 = vst.msk [vmem:[#allocation2 + $0x10] sm:$0xff] (!%p804_p10), %vm264_vm0, %v1106_v0  ;;  %268 = vst.msk [vmem:[#allocation2 + $0x18] sm:$0xff] (!%p804_p10), %vm264_vm0, %v1106_v0 }
  0x3f   : > { %269 = vst.msk [vmem:[#allocation2 + $0x20] sm:$0xff] (!%p804_p10), %vm264_vm0, %v1106_v0  ;;  %270 = vst.msk [vmem:[#allocation2 + $0x28] sm:$0xff] (!%p804_p10), %vm264_vm0, %v1106_v0 }
  0x40   : > { %271 = vst.msk [vmem:[#allocation2 + $0x30] sm:$0xff] (!%p804_p10), %vm264_vm0, %v1106_v0  ;;  %272 = vst.msk [vmem:[#allocation2 + $0x38] sm:$0xff] (!%p804_p10), %vm264_vm0, %v1106_v0 }
  0x41   : > { %273 = vst.msk [vmem:[#allocation3] sm:$0xff] (!%p804_p10), %vm264_vm0, %v1107_v1  ;;  %274 = vst.msk [vmem:[#allocation3 + $0x8] sm:$0xff] (!%p804_p10), %vm264_vm0, %v1107_v1 }
  0x42   : > { %275 = vst.msk [vmem:[#allocation3 + $0x10] sm:$0xff] (!%p804_p10), %vm264_vm0, %v1107_v1  ;;  %276 = vst.msk [vmem:[#allocation3 + $0x18] sm:$0xff] (!%p804_p10), %vm264_vm0, %v1107_v1 }
  0x43   : > { %277 = vst.msk [vmem:[#allocation3 + $0x20] sm:$0xff] %vm264_vm0, %v1107_v1  ;;  %278 = vst.msk [vmem:[#allocation3 + $0x28] sm:$0xff] %vm264_vm0, %v1107_v1 }
  0x44   : > { %279 = vst.msk [vmem:[#allocation3 + $0x30] sm:$0xff] %vm264_vm0, %v1107_v1  ;;  %280 = vst.msk [vmem:[#allocation3 + $0x38] sm:$0xff] %vm264_vm0, %v1107_v1 }
  0x45 PF: > { %v283_v2 = vld [vmem:[%s1259_s14 + $0x10] sm:$0xff]  ;;  %v281_v3 = vld [vmem:[%s1259_s14] sm:$0xff]  ;;  %v284_v4 = vld [vmem:[%s1259_s14 + $0x18] sm:$0xff]  ;;  %vm321_vm1 = vcmask 7168   ;;  %p805_p7 = scmp.ne.s32.totalorder %s1084_s21, 1 }
  0x46   : > { %301 = vadd.xlane.f32.xlu1 %v283_v2  ;;  %297 = vadd.xlane.f32.xlu0 %v281_v3  ;;  %v282_v5 = vld [vmem:[%s1259_s14 + $0x8] sm:$0xff]  ;;  %v285_v7 = vld [vmem:[%s1259_s14 + $0x20] sm:$0xff]  ;;  %v288_v8 = vld [vmem:[%s1259_s14 + $0x38] sm:$0xff]  ;;  %v1108_v61 = vmov (!%p805_p7), 0.0|0.0   ;;  %vm1109_vm2 = vmmov (!%p805_p7), 0   ;;  %vm400_vm3 = vcmask (!%p805_p7), 523264  }
  0x47   : > { %v286_v6 = vld [vmem:[%s1259_s14 + $0x28] sm:$0xff]  ;;  %v287_v9 = vld [vmem:[%s1259_s14 + $0x30] sm:$0xff]  ;;  %v289_v11 = vld [vmem:[#allocation2] sm:$0xff]  ;;  %911 = vmatprep.subr.bf16.mxu1 (!%p805_p7), %v1108_v61  ;;  %899 = vmatprep.subr.bf16.mxu0 (!%p805_p7), %v1108_v61  ;;  %vm571_vm4 = vcmask (!%p805_p7), 31744   ;;  %vm596_vm5 = vcmask (!%p805_p7), 1043456  }
  0x48   : > { %v291_v10 = vld [vmem:[#allocation2 + $0x10] sm:$0xff]  ;;  %v292_v16 = vld [vmem:[#allocation2 + $0x18] sm:$0xff]  ;;  %v290_v17 = vld [vmem:[#allocation2 + $0x8] sm:$0xff] }
  0x49   : > { %v294_v22 = vld [vmem:[#allocation2 + $0x28] sm:$0xff]  ;;  %v293_v23 = vld [vmem:[#allocation2 + $0x20] sm:$0xff]  ;;  %v296_v28 = vld [vmem:[#allocation2 + $0x38] sm:$0xff] }
  0x4a   : > { %303 = vadd.xlane.f32.xlu1 %v284_v4  ;;  %299 = vadd.xlane.f32.xlu0 %v282_v5  ;;  %v295_v29 = vld [vmem:[#allocation2 + $0x30] sm:$0xff]  ;;  %v331_v34 = vld [vmem:[#allocation3 + $0x8] sm:$0xff]  ;;  %v330_v35 = vld [vmem:[#allocation3] sm:$0xff] }
  0x4b   : > { %v333_v40 = vld [vmem:[#allocation3 + $0x18] sm:$0xff]  ;;  %v332_v41 = vld [vmem:[#allocation3 + $0x10] sm:$0xff]  ;;  %v335_v46 = vld [vmem:[#allocation3 + $0x28] sm:$0xff] }
  0x4c   : > { %v334_v47 = vld [vmem:[#allocation3 + $0x20] sm:$0xff]  ;;  %v337_v52 = vld [vmem:[#allocation3 + $0x38] sm:$0xff]  ;;  %v336_v53 = vld [vmem:[#allocation3 + $0x30] sm:$0xff] }
  0x4e   : > { %307 = vadd.xlane.f32.xlu1 %v286_v6  ;;  %305 = vadd.xlane.f32.xlu0 %v285_v7 }
  0x52   : > { %311 = vadd.xlane.f32.xlu1 %v288_v8  ;;  %309 = vadd.xlane.f32.xlu0 %v287_v9 }
  0x56   : > { %340 = vmax.xlane.f32.xlu1 %v282_v5  ;;  %338 = vmax.xlane.f32.xlu0 %v281_v3 }
  0x5a   : > { %344 = vmax.xlane.f32.xlu1 %v284_v4  ;;  %342 = vmax.xlane.f32.xlu0 %v283_v2 }
  0x5e   : > { %348 = vmax.xlane.f32.xlu1 %v286_v6  ;;  %346 = vmax.xlane.f32.xlu0 %v285_v7  ;;  %v1110_v6 = vmov (!%p805_p7), 0.0  }
  0x5f   : > { %882 = vmatprep.mubr.msk.f32.mxu1 (!%p805_p7), %vm1109_vm2, %v1110_v6  ;;  %863 = vmatprep.mubr.msk.f32.mxu0 (!%p805_p7), %vm1109_vm2, %v1110_v6 }
  0x62   : > { %352 = vmax.xlane.f32.xlu1 %v288_v8  ;;  %350 = vmax.xlane.f32.xlu0 %v287_v9 }
  0xd3   : > { %v302_v12 = vpop.xlane.xlu1 %301  ;;  %v298_v13 = vpop.xlane.xlu0 %297 }
  0xd4   : > { %v315_v14 = vadd.f32 %v302_v12, %v291_v10  ;;  %v313_v15 = vadd.f32 %v298_v13, %v289_v11 }
  0xd6   : > { %324 = vst.msk [vmem:[#allocation2 + $0x10] sm:$0xff] %vm321_vm1, %v315_v14  ;;  %322 = vst.msk [vmem:[#allocation2] sm:$0xff] %vm321_vm1, %v313_v15 }
  0xd7   : > { %v304_v18 = vpop.xlane.xlu1 %303  ;;  %v300_v19 = vpop.xlane.xlu0 %299 }
  0xd8   : > { %v316_v20 = vadd.f32 %v304_v18, %v292_v16  ;;  %v314_v21 = vadd.f32 %v300_v19, %v290_v17 }
  0xda   : > { %325 = vst.msk [vmem:[#allocation2 + $0x18] sm:$0xff] %vm321_vm1, %v316_v20  ;;  %323 = vst.msk [vmem:[#allocation2 + $0x8] sm:$0xff] %vm321_vm1, %v314_v21 }
  0xdb   : > { %v308_v24 = vpop.xlane.xlu1 %307  ;;  %v306_v25 = vpop.xlane.xlu0 %305 }
  0xdc   : > { %v318_v26 = vadd.f32 %v308_v24, %v294_v22  ;;  %v317_v27 = vadd.f32 %v306_v25, %v293_v23 }
  0xdd   : > { %v374_v60 = vld [vmem:[#allocation2] sm:$0xff] (!%p805_p7)  ;;  %v376_v4 = vld [vmem:[#allocation2 + $0x10] sm:$0xff] (!%p805_p7) }
  0xde   : > { %327 = vst.msk [vmem:[#allocation2 + $0x28] sm:$0xff] %vm321_vm1, %v318_v26  ;;  %326 = vst.msk [vmem:[#allocation2 + $0x20] sm:$0xff] %vm321_vm1, %v317_v27  ;;  %v382_v0 = vmul.f32 (!%p805_p7), 0.00390625, %v374_v60  ;;  %v384_v8 = vmul.f32 (!%p805_p7), 0.00390625, %v376_v4 }
  0xdf   : > { %v312_v30 = vpop.xlane.xlu1 %311  ;;  %v310_v31 = vpop.xlane.xlu0 %309 }
  0xe0   : > { %v320_v32 = vadd.f32 %v312_v30, %v296_v28  ;;  %v319_v33 = vadd.f32 %v310_v31, %v295_v29  ;;  %v398_v28 = vld [vmem:[%s1417_s1] sm:$0xf] (!%p805_p7) }
  0xe1   : > { %v375_v63 = vld [vmem:[#allocation2 + $0x8] sm:$0xff] (!%p805_p7)  ;;  %v377_v5 = vld [vmem:[#allocation2 + $0x18] sm:$0xff] (!%p805_p7)  ;;  %v547_v29 = vld [vmem:[%s1419_s3] sm:$0xff] (!%p805_p7) }
  0xe2   : > { %329 = vst.msk [vmem:[#allocation2 + $0x38] sm:$0xff] %vm321_vm1, %v320_v32  ;;  %328 = vst.msk [vmem:[#allocation2 + $0x30] sm:$0xff] %vm321_vm1, %v319_v33  ;;  %v383_v3 = vmul.f32 (!%p805_p7), 0.00390625, %v375_v63  ;;  %v385_v9 = vmul.f32 (!%p805_p7), 0.00390625, %v377_v5  ;;  %v551_v30 = vld [vmem:[%s1419_s3 + $0x20] sm:$0xff] (!%p805_p7) }
  0xe3   : > { %v341_v36 = vpop.xlane.xlu1 %340  ;;  %v339_v37 = vpop.xlane.xlu0 %338  ;;  %v399_v31 = vld [vmem:[%s1418_s2] sm:$0xf] (!%p805_p7) }
  0xe4   : > { %v355_v38 = vmax.f32 %v331_v34, %v341_v36  ;;  %v354_v39 = vmax.f32 %v330_v35, %v339_v37  ;;  %v900_v12 = vpack.c.bf16 (!%p805_p7), %v383_v3, %v382_v0  ;;  %v903_v15 = vpack.c.bf16 (!%p805_p7), %v385_v9, %v384_v8 }
  0xe5   : > { %v378_v10 = vld [vmem:[#allocation2 + $0x20] sm:$0xff] (!%p805_p7)  ;;  %v379_v11 = vld [vmem:[#allocation2 + $0x28] sm:$0xff] (!%p805_p7) }
  0xe6   : > { %363 = vst.msk [vmem:[#allocation3 + $0x8] sm:$0xff] %vm321_vm1, %v355_v38  ;;  %362 = vst.msk [vmem:[#allocation3] sm:$0xff] %vm321_vm1, %v354_v39  ;;  %901 = vmatpush3.bf16.msra.mxu0 (!%p805_p7), %v900_v12  ;;  %v386_v16 = vmul.f32 (!%p805_p7), 0.00390625, %v378_v10  ;;  %v387_v17 = vmul.f32 (!%p805_p7), 0.00390625, %v379_v11 }
  0xe7   : > { %v345_v42 = vpop.xlane.xlu1 %344  ;;  %v343_v43 = vpop.xlane.xlu0 %342  ;;  %902 = vmatprep.subr.bf16.mxu0 (!%p805_p7), %v1108_v61 }
  0xe8   : > { %v357_v44 = vmax.f32 %v333_v40, %v345_v42  ;;  %v356_v45 = vmax.f32 %v332_v41, %v343_v43  ;;  %v906_v23 = vpack.c.bf16 (!%p805_p7), %v387_v17, %v386_v16  ;;  %v548_v41 = vld [vmem:[%s1419_s3 + $0x8] sm:$0xff] (!%p805_p7)  ;;  %v549_v43 = vld [vmem:[%s1419_s3 + $0x10] sm:$0xff] (!%p805_p7) }
  0xe9   : > { %v380_v19 = vld [vmem:[#allocation2 + $0x30] sm:$0xff] (!%p805_p7)  ;;  %v381_v20 = vld [vmem:[#allocation2 + $0x38] sm:$0xff] (!%p805_p7)  ;;  %v552_v42 = vld [vmem:[%s1419_s3 + $0x28] sm:$0xff] (!%p805_p7) }
  0xea   : > { %365 = vst.msk [vmem:[#allocation3 + $0x18] sm:$0xff] %vm321_vm1, %v357_v44  ;;  %364 = vst.msk [vmem:[#allocation3 + $0x10] sm:$0xff] %vm321_vm1, %v356_v45  ;;  %904 = vmatpush3.bf16.msra.mxu0 (!%p805_p7), %v903_v15  ;;  %v388_v24 = vmul.f32 (!%p805_p7), 0.00390625, %v380_v19  ;;  %v389_v25 = vmul.f32 (!%p805_p7), 0.00390625, %v381_v20  ;;  %v553_v44 = vld [vmem:[%s1419_s3 + $0x30] sm:$0xff] (!%p805_p7)  ;;  %v550_v45 = vld [vmem:[%s1419_s3 + $0x18] sm:$0xff] (!%p805_p7) }
  0xeb   : > { %v349_v48 = vpop.xlane.xlu1 %348  ;;  %v347_v49 = vpop.xlane.xlu0 %346  ;;  %905 = vmatprep.subr.bf16.mxu0 (!%p805_p7), %v1108_v61 }
  0xec   : > { %v359_v50 = vmax.f32 %v335_v46, %v349_v48  ;;  %v358_v51 = vmax.f32 %v334_v47, %v347_v49  ;;  %373 = sbr.rel (%p805_p7) target bundleno = 695 (0x2b7), region = 52  ;;  %v909_v27 = vpack.c.bf16 (!%p805_p7), %v389_v25, %v388_v24  ;;  %v554_v46 = vld [vmem:[%s1419_s3 + $0x38] sm:$0xff] (!%p805_p7)  ;;  %v556_v47 = vld [vmem:[%s1420_s4 + $0x8] sm:$0xff] (!%p805_p7)  ;;  %v555_v49 = vld [vmem:[%s1420_s4] sm:$0xff] (!%p805_p7) }
  0xed   : > { %v390_v58 = vld [vmem:[#allocation3] sm:$0xff] (!%p805_p7)  ;;  %v391_v59 = vld [vmem:[#allocation3 + $0x8] sm:$0xff] (!%p805_p7) }
  0xee   : > { %367 = vst.msk [vmem:[#allocation3 + $0x28] sm:$0xff] %vm321_vm1, %v359_v50  ;;  %366 = vst.msk [vmem:[#allocation3 + $0x20] sm:$0xff] %vm321_vm1, %v358_v51  ;;  %v912_v62 = vpack.c.bf16 (!%p805_p7), %v391_v59, %v390_v58  ;;  %907 = vmatpush3.bf16.msra.mxu0 (!%p805_p7), %v906_v23  ;;  %v560_v48 = vld [vmem:[%s1420_s4 + $0x28] sm:$0xff] (!%p805_p7)  ;;  %v559_v50 = vld [vmem:[%s1420_s4 + $0x20] sm:$0xff] (!%p805_p7)  ;;  %v564_v51 = vmul.f32 (!%p805_p7), 2.0, %v556_v47 }
  0xef   : > { %v353_v54 = vpop.xlane.xlu1 %352  ;;  %v351_v55 = vpop.xlane.xlu0 %350  ;;  %908 = vmatprep.subr.bf16.mxu0 (!%p805_p7), %v1108_v61  ;;  %v561_v58 = vld [vmem:[%s1420_s4 + $0x30] sm:$0xff] (!%p805_p7) }
  0xf0   : > { %v361_v56 = vmax.f32 %v337_v52, %v353_v54  ;;  %v360_v57 = vmax.f32 %v336_v53, %v351_v55  ;;  %913 = vmatpush3.bf16.msra.mxu1 (!%p805_p7), %v912_v62  ;;  %v568_v52 = vmul.f32 (!%p805_p7), 2.0, %v560_v48  ;;  %v563_v53 = vmul.f32 (!%p805_p7), 2.0, %v555_v49  ;;  %v558_v55 = vld [vmem:[%s1420_s4 + $0x18] sm:$0xff] (!%p805_p7) }
  0xf1   : > { %v392_v1 = vld [vmem:[#allocation3 + $0x10] sm:$0xff] (!%p805_p7)  ;;  %v393_v2 = vld [vmem:[#allocation3 + $0x18] sm:$0xff] (!%p805_p7)  ;;  %914 = vmatprep.subr.bf16.mxu1 (!%p805_p7), %v1108_v61  ;;  %v567_v54 = vmul.f32 (!%p805_p7), 2.0, %v559_v50  ;;  %v569_v6 = vmul.f32 (!%p805_p7), 2.0, %v561_v58 }
  0xf2   : > { %369 = vst.msk [vmem:[#allocation3 + $0x38] sm:$0xff] %vm321_vm1, %v361_v56  ;;  %368 = vst.msk [vmem:[#allocation3 + $0x30] sm:$0xff] %vm321_vm1, %v360_v57  ;;  %v915_v7 = vpack.c.bf16 (!%p805_p7), %v393_v2, %v392_v1  ;;  %910 = vmatpush3.bf16.msra.mxu0 (!%p805_p7), %v909_v27  ;;  %v562_v56 = vld [vmem:[%s1420_s4 + $0x38] sm:$0xff] (!%p805_p7)  ;;  %v557_v57 = vld [vmem:[%s1420_s4 + $0x10] sm:$0xff] (!%p805_p7)  ;;  %v566_v1 = vmul.f32 (!%p805_p7), 2.0, %v558_v55 }
  0xf3   : > { %v570_v2 = vmul.f32 2.0, %v562_v56  ;;  %v565_v5 = vmul.f32 2.0, %v557_v57 }
  0xf4   : > { %916 = vmatpush3.bf16.msra.mxu1 %v915_v7 }
  0xf5   : > { %v394_v13 = vld [vmem:[#allocation3 + $0x20] sm:$0xff]  ;;  %v395_v14 = vld [vmem:[#allocation3 + $0x28] sm:$0xff]  ;;  %917 = vmatprep.subr.bf16.mxu1 %v1108_v61  ;;  %864 = vmatmul.mubr.msk.f32.vlgmr.msra.gmra.mrb[0].mxu0 %vm400_vm3, %v398_v28 }
  0xf6   : > { %v918_v18 = vpack.c.bf16 %v395_v14, %v394_v13  ;;  %887 = vmatprep.mubr.msk.f32.mxu0 %vm571_vm4, %v547_v29 }
  0xf8   : > { %919 = vmatpush3.bf16.msra.mxu1 %v918_v18 }
  0xf9   : > { %v396_v21 = vld [vmem:[#allocation3 + $0x30] sm:$0xff]  ;;  %v397_v22 = vld [vmem:[#allocation3 + $0x38] sm:$0xff]  ;;  %920 = vmatprep.subr.bf16.mxu1 %v1108_v61 }
  0xfa   : > { %v921_v26 = vpack.c.bf16 %v397_v22, %v396_v21 }
  0xfc   : > { %922 = vmatpush3.bf16.msra.mxu1 %v921_v26 }
  0xff   : > { %883 = vmatmul.mubr.msk.f32.vlgmr.msra.gmra.mrb[0].mxu1 %vm400_vm3, %v398_v28 }
 0x100   : > { %893 = vmatprep.mubr.msk.f32.mxu1 %vm571_vm4, %v551_v30 }
 0x1c8   : > { %v470_v35 = vpop.f32.mrb[0].mxu0 }
 0x1c9   : > { %v471_v37 = vadd.f32 %v470_v35, %v399_v31  ;;  %v865_v38 = vpop.f32.mrb[1].mxu0 }
 0x1cb   : > { %v474_v39 = vmax.f32 %v471_v37, 0.0 }
 0x1d2   : > { %v541_v32 = vpop.f32.mrb[0].mxu1 }
 0x1d3   : > { %v542_v33 = vadd.f32 %v541_v32, %v399_v31  ;;  %v884_v34 = vpop.f32.mrb[1].mxu1 }
 0x1d5   : > { %v545_v36 = vmax.f32 %v542_v33, 0.0 }
 0x1d7   : > { %v546_v40 = vadd.f32 %v545_v36, %v474_v39 }
 0x1d9   : > { %885 = vmatprep.subr.msk.mxu0 %vm596_vm5, %v546_v40  ;;  %923 = vmatprep.subr.msk.mxu1 %vm596_vm5, %v546_v40 }
 0x1da   : > { %886 = vmatpush3.msk.msra.mxu0 %vm596_vm5, %v546_v40  ;;  %924 = vmatpush3.msk.msra.mxu1 %vm596_vm5, %v546_v40 }
 0x1db   : > { %888 = vmatmul.mubr.msk.f32.vlgmr.msra.gmra.mrb[2].mxu0 %vm571_vm4, %v548_v41  ;;  %894 = vmatmul.mubr.msk.f32.vlgmr.msra.gmra.mrb[2].mxu1 %vm571_vm4, %v552_v42 }
 0x1dc   : > { %890 = vmatprep.mubr.msk.f32.mxu0 %vm571_vm4, %v549_v43  ;;  %896 = vmatprep.mubr.msk.f32.mxu1 %vm571_vm4, %v553_v44 }
 0x1df   : > { %891 = vmatmul.mubr.msk.f32.gmra.mrb[4].mxu0 %vm571_vm4, %v550_v45  ;;  %897 = vmatmul.mubr.msk.f32.gmra.mrb[4].mxu1 %vm571_vm4, %v554_v46 }
 0x2ae   : > { %v889_v59 = vpop.f32.mrb[2].mxu0  ;;  %v895_v60 = vpop.f32.mrb[2].mxu1 }
 0x2af   : > { %v672_v61 = vadd.f32 %v889_v59, %v564_v51  ;;  %v692_v62 = vadd.f32 %v895_v60, %v568_v52  ;;  %v666_v63 = vpop.f32.mrb[3].mxu0  ;;  %v686_v0 = vpop.f32.mrb[3].mxu1 }
 0x2b0   : > { %v667_v3 = vadd.f32 %v666_v63, %v563_v53  ;;  %v687_v4 = vadd.f32 %v686_v0, %v567_v54 }
 0x2b1   : > { %706 = vst.msk [vmem:[%s1270_s30 + $0x8] sm:$0xff] %vm321_vm1, %v672_v61  ;;  %710 = vst.msk [vmem:[%s1270_s30 + $0x28] sm:$0xff] %vm321_vm1, %v692_v62 }
 0x2b2   : > { %705 = vst.msk [vmem:[%s1270_s30] sm:$0xff] %vm321_vm1, %v667_v3  ;;  %709 = vst.msk [vmem:[%s1270_s30 + $0x20] sm:$0xff] %vm321_vm1, %v687_v4  ;;  %v892_v7 = vpop.f32.mrb[4].mxu0  ;;  %v898_v8 = vpop.f32.mrb[4].mxu1 }
 0x2b3   : > { %v682_v9 = vadd.f32 %v892_v7, %v566_v1  ;;  %v702_v10 = vadd.f32 %v898_v8, %v570_v2  ;;  %v676_v11 = vpop.f32.mrb[5].mxu0  ;;  %v696_v12 = vpop.f32.mrb[5].mxu1 }
 0x2b4   : > { %v677_v13 = vadd.f32 %v676_v11, %v565_v5  ;;  %v697_v14 = vadd.f32 %v696_v12, %v569_v6 }
 0x2b5   : > { %708 = vst.msk [vmem:[%s1270_s30 + $0x18] sm:$0xff] %vm321_vm1, %v682_v9  ;;  %712 = vst.msk [vmem:[%s1270_s30 + $0x38] sm:$0xff] %vm321_vm1, %v702_v10 }
 0x2b6   : > { %707 = vst.msk [vmem:[%s1270_s30 + $0x10] sm:$0xff] %vm321_vm1, %v677_v13  ;;  %711 = vst.msk [vmem:[%s1270_s30 + $0x30] sm:$0xff] %vm321_vm1, %v697_v14 }
 0x2b7 PF: > { %s18_s25 = sadd.s32 1, %s1100_s25   ;;  %s1428_s7 = sld [smem:[#allocation7_spill]] }
 0x2b8   : > { %p15_p6 = scmp.ge.s32.totalorder %s18_s25, 6   ;;  %s1429_s18 = smov %s1076_s19 }
 0x2b9   : > { %s1430_s19 = smov %s1080_s20  ;;  %s1431_s20 = smov %s1208_s13 }
 0x2ba   : > { %s1432_s21 = smov %s1092_s23  ;;  %s1433_s22 = smov %s1096_s24 }
 0x2bb   : > { %s1435_s24 = smov %s1441_s28  ;;  %17 = sbr.rel (!%p15_p6) target bundleno = 5 (0x5), region = 88 }
 0x2bd   : > { %s1434_s23 = smov %s1428_s7 }
 0x2c2   :  { %734 = vsyncpa [#allocation5], 1 }
 0x2c3   :  { %736 = vsyncpa [#allocation5 + $0x1], 1 }

</bundles_post_ra>
